<compile_context>
chip_gen: v5e
topology: v5e:2x2
jax: 0.10.0
libtpu: 0.0.40
codegen_flags: <defaults>
</compile_context>

<pallas_src>
import jax
import jax.numpy as jnp
from jax.experimental import pallas as pl
from jax.experimental.pallas import tpu as pltpu

LANE = 128  # TPU lane width; last dims padded to a multiple of this.


def _round_up(x, m):
    return ((x + m - 1) // m) * m


def encoder_kernel(x_ref, w1_ref, b1_ref, w2_ref, b2_ref, z_ref):
    # First linear layer: (tb, Kp)bf16 @ (Kp, Hp)bf16 -> f32 accumulator + bias.
    x = x_ref[...]
    h = jnp.dot(x, w1_ref[...], preferred_element_type=jnp.float32) + b1_ref[...]
    # LeakyReLU with PyTorch default negative_slope = 0.01 (f32 on the VPU).
    h = jnp.where(h > 0, h, 0.01 * h)
    # Second linear layer: cast activations to bf16 for the MXU, accumulate in f32.
    z = jnp.dot(h.astype(w2_ref.dtype), w2_ref[...],
                preferred_element_type=jnp.float32) + b2_ref[...]
    z_ref[...] = z.astype(z_ref.dtype)


def encoder_forward(x, w1, b1, w2, b2, *, tb=None, compute_dtype=jnp.bfloat16):
    """x: [B, input_dim]; w1: [input_dim, hidden]; b1: [hidden] or [1, hidden];
       w2: [hidden, latent]; b2: [latent] or [1, latent]  ->  z: [B, latent]"""
    B, input_dim = x.shape
    hidden_dim = w1.shape[1]
    latent_dim = w2.shape[1]

    # Lane-dense padded feature dims.
    Kp = _round_up(input_dim, LANE)
    Hp = _round_up(hidden_dim, LANE)
    Lp = _round_up(latent_dim, LANE)

    # Explicit batch tile: multiple of 8 (sublane), 128/256 when the batch is
    # large enough to give a multi-step grid (pipelining + megacore sharding).
    if tb is None:
        if B >= 512:
            tb = 256
        elif B >= 256:
            tb = 128
        else:
            tb = _round_up(B, 8)
    Bp = _round_up(B, tb)
    grid = (Bp // tb,)

    out_dtype = x.dtype

    # Zero-padded operands.  Padded rows/cols are zero, so padded hidden
    # channels stay exactly 0 through bias + LeakyReLU and contribute nothing
    # to the second matmul; padded batch rows / latent cols are sliced away.
    xp = jnp.zeros((Bp, Kp), compute_dtype).at[:B, :input_dim].set(
        x.astype(compute_dtype))
    w1p = jnp.zeros((Kp, Hp), compute_dtype).at[:input_dim, :hidden_dim].set(
        w1.astype(compute_dtype))
    w2p = jnp.zeros((Hp, Lp), compute_dtype).at[:hidden_dim, :latent_dim].set(
        w2.astype(compute_dtype))
    b1p = jnp.zeros((1, Hp), jnp.float32).at[:, :hidden_dim].set(
        jnp.asarray(b1, jnp.float32).reshape(1, hidden_dim))
    b2p = jnp.zeros((1, Lp), jnp.float32).at[:, :latent_dim].set(
        jnp.asarray(b2, jnp.float32).reshape(1, latent_dim))

    # VMEM budget: double-buffered inputs/outputs + headroom for f32
    # intermediates; capped at 48 MiB to stay safe on v7x's 64 MiB VMEM.
    itemsize = jnp.dtype(compute_dtype).itemsize
    tile_bytes = (2 * tb * Kp * itemsize          # x tiles
                  + 2 * Kp * Hp * itemsize        # W1 (resident, double-buffered)
                  + 2 * Hp * Lp * itemsize        # W2
                  + 2 * Hp * 4 + 2 * Lp * 4       # biases (f32)
                  + 2 * tb * Lp * 4)              # output tiles (f32)
    vmem_limit = int(min(48 * 1024 * 1024, max(4 * tile_bytes, 8 * 1024 * 1024)))

    flops = 2 * Bp * (Kp * Hp + Hp * Lp)
    bytes_accessed = (xp.size * itemsize + w1p.size * itemsize
                      + w2p.size * itemsize + b1p.size * 4 + b2p.size * 4
                      + Bp * Lp * jnp.dtype(out_dtype).itemsize)

    out = pl.pallas_call(
        encoder_kernel,
        out_shape=jax.ShapeDtypeStruct((Bp, Lp), out_dtype),
        grid_spec=pltpu.PrefetchScalarGridSpec(
            num_scalar_prefetch=0,
            grid=grid,
            in_specs=[
                pl.BlockSpec((tb, Kp), lambda i: (i, 0)),   # x tile (streamed)
                pl.BlockSpec((Kp, Hp), lambda i: (0, 0)),   # W1 (resident)
                pl.BlockSpec((1, Hp), lambda i: (0, 0)),    # b1
                pl.BlockSpec((Hp, Lp), lambda i: (0, 0)),   # W2 (resident)
                pl.BlockSpec((1, Lp), lambda i: (0, 0)),    # b2
            ],
            out_specs=pl.BlockSpec((tb, Lp), lambda i: (i, 0)),
        ),
        compiler_params=pltpu.CompilerParams(
            dimension_semantics=("parallel",),
            vmem_limit_bytes=vmem_limit,
        ),
        cost_estimate=pl.CostEstimate(
            flops=flops, transcendentals=0, bytes_accessed=bytes_accessed),
    )(xp, w1p, b1p, w2p, b2p)

    # Slice back to the logical result.
    return out[:B, :latent_dim]


def reference_forward(x, w1, b1, w2, b2, compute_dtype=jnp.bfloat16):
    # Mirrors the kernel's bf16-input / f32-accumulate numerics.
    xc = x.astype(compute_dtype)
    w1c = w1.astype(compute_dtype)
    w2c = w2.astype(compute_dtype)
    h = jnp.dot(xc, w1c, preferred_element_type=jnp.float32) \
        + jnp.asarray(b1, jnp.float32).reshape(1, -1)
    h = jnp.where(h > 0, h, 0.01 * h)
    z = jnp.dot(h.astype(compute_dtype), w2c, preferred_element_type=jnp.float32) \
        + jnp.asarray(b2, jnp.float32).reshape(1, -1)
    return z


if __name__ == "__main__":
    # Small shapes consistent with the module's forward: x is [batch, input_dim].
    # batch=256 gives a 2-step grid (tb=128): auto-pipelining + v7x megacore.
    batch, input_dim, hidden_dim, latent_dim = 256, 32, 64, 16

    key = jax.random.PRNGKey(0)
    k_x, k_w1, k_b1, k_w2, k_b2 = jax.random.split(key, 5)

    x = jax.random.normal(k_x, (batch, input_dim), dtype=jnp.float32)

    # Deterministic synthetic parameters (PyTorch Linear shapes: W [out, in], b [out]),
    # stored transposed as [in, out] for the kernel's x @ W convention.
    w1 = (jax.random.normal(k_w1, (hidden_dim, input_dim), dtype=jnp.float32) * 0.1).T
    b1 = jax.random.normal(k_b1, (hidden_dim,), dtype=jnp.float32) * 0.1
    w2 = (jax.random.normal(k_w2, (latent_dim, hidden_dim), dtype=jnp.float32) * 0.1).T
    b2 = jax.random.normal(k_b2, (latent_dim,), dtype=jnp.float32) * 0.1

    z = encoder_forward(x, w1, b1, w2, b2)
    z = jax.block_until_ready(z)

    z_ref = reference_forward(x, w1, b1, w2, b2)
    assert z.shape == (batch, latent_dim)
    # bf16 MXU inputs, f32 accumulation -> compare against matching reference.
    assert jnp.allclose(z, z_ref, atol=2e-3, rtol=2e-3), \
        float(jnp.max(jnp.abs(z - z_ref)))
    # Sanity check vs full-f32 math (loose: bf16 quantization of inputs).
    z_f32 = x @ w1 + b1.reshape(1, -1)
    z_f32 = jnp.where(z_f32 > 0, z_f32, 0.01 * z_f32) @ w2 + b2.reshape(1, -1)
    assert jnp.allclose(z, z_f32, atol=5e-2, rtol=5e-2)

    print("KERNEL_OK")
</pallas_src>

<mosaic_0001>
module attributes {stable_mosaic.version = 11 : i64} {
  func.func @encoder_kernel(%arg0: i32, %arg1: memref<128x128xbf16, #tpu.memory_space<vmem>>, %arg2: memref<128x128xbf16, #tpu.memory_space<vmem>>, %arg3: memref<1x128xf32, #tpu.memory_space<vmem>>, %arg4: memref<128x128xbf16, #tpu.memory_space<vmem>>, %arg5: memref<1x128xf32, #tpu.memory_space<vmem>>, %arg6: memref<128x128xf32, #tpu.memory_space<vmem>>) attributes {dimension_semantics = [#tpu.dimension_semantics<parallel>], iteration_bounds = array<i64: 2>, scalar_prefetch = 0 : i64, scratch_operands = 0 : i64, tpu.core_type = #tpu.core_type<tc>, window_params = [{transform_indices = @transform_0, window_bounds = array<i64: 128, 128>}, {pipeline_mode = #tpu.pipeline_mode<synchronous>, transform_indices = @transform_1, window_bounds = array<i64: 128, 128>}, {pipeline_mode = #tpu.pipeline_mode<synchronous>, transform_indices = @transform_2, window_bounds = array<i64: 1, 128>}, {pipeline_mode = #tpu.pipeline_mode<synchronous>, transform_indices = @transform_3, window_bounds = array<i64: 128, 128>}, {pipeline_mode = #tpu.pipeline_mode<synchronous>, transform_indices = @transform_4, window_bounds = array<i64: 1, 128>}, {transform_indices = @transform_5, window_bounds = array<i64: 128, 128>}]} {
    %c0 = arith.constant 0 : index
    %c0_0 = arith.constant 0 : index
    %0 = vector.load %arg1[%c0, %c0_0] : memref<128x128xbf16, #tpu.memory_space<vmem>>, vector<128x128xbf16>
    %c0_1 = arith.constant 0 : index
    %c0_2 = arith.constant 0 : index
    %1 = vector.load %arg2[%c0_1, %c0_2] : memref<128x128xbf16, #tpu.memory_space<vmem>>, vector<128x128xbf16>
    %cst = arith.constant dense<0.000000e+00> : vector<128x128xf32>
    %2 = tpu.matmul %0, %1, %cst {dimension_numbers = #tpu.dot_dimension_numbers<[1], [0], [0], [1], [0, 0, 1, 1], [], []>} : vector<128x128xbf16>, vector<128x128xbf16>, vector<128x128xf32> -> vector<128x128xf32>
    %c0_3 = arith.constant 0 : index
    %c0_4 = arith.constant 0 : index
    %3 = vector.load %arg3[%c0_3, %c0_4] : memref<1x128xf32, #tpu.memory_space<vmem>>, vector<1x128xf32>
    %4 = vector.broadcast %3 : vector<1x128xf32> to vector<128x128xf32>
    %5 = arith.addf %2, %4 : vector<128x128xf32>
    %cst_5 = arith.constant 0.000000e+00 : f32
    %6 = vector.broadcast %cst_5 : f32 to vector<128x128xf32>
    %7 = arith.cmpf ogt, %5, %6 : vector<128x128xf32>
    %cst_6 = arith.constant 0.00999999977 : f32
    %8 = vector.broadcast %cst_6 : f32 to vector<128x128xf32>
    %9 = arith.mulf %8, %5 : vector<128x128xf32>
    %10 = arith.select %7, %5, %9 : vector<128x128xi1>, vector<128x128xf32>
    %11 = arith.truncf %10 : vector<128x128xf32> to vector<128x128xbf16>
    %c0_7 = arith.constant 0 : index
    %c0_8 = arith.constant 0 : index
    %12 = vector.load %arg4[%c0_7, %c0_8] : memref<128x128xbf16, #tpu.memory_space<vmem>>, vector<128x128xbf16>
    %cst_9 = arith.constant dense<0.000000e+00> : vector<128x128xf32>
    %13 = tpu.matmul %11, %12, %cst_9 {dimension_numbers = #tpu.dot_dimension_numbers<[1], [0], [0], [1], [0, 0, 1, 1], [], []>} : vector<128x128xbf16>, vector<128x128xbf16>, vector<128x128xf32> -> vector<128x128xf32>
    %c0_10 = arith.constant 0 : index
    %c0_11 = arith.constant 0 : index
    %14 = vector.load %arg5[%c0_10, %c0_11] : memref<1x128xf32, #tpu.memory_space<vmem>>, vector<1x128xf32>
    %15 = vector.broadcast %14 : vector<1x128xf32> to vector<128x128xf32>
    %16 = arith.addf %13, %15 : vector<128x128xf32>
    %c0_12 = arith.constant 0 : index
    %c0_13 = arith.constant 0 : index
    %17 = vector.load %arg6[%c0_12, %c0_13] : memref<128x128xf32, #tpu.memory_space<vmem>>, vector<128x128xf32>
    tpu.vector_store %arg6[%c0_12, %c0_13], %16 {strides = array<i32>} : memref<128x128xf32, #tpu.memory_space<vmem>>, vector<128x128xf32>,
    return
  }
  func.func @transform_0(%arg0: i32) -> (i32, i32) {
    %c0_i32 = arith.constant 0 : i32
    %c0_i32_0 = arith.constant 0 : i32
    return %arg0, %c0_i32 : i32, i32
  }
  func.func @transform_1(%arg0: i32) -> (i32, i32) {
    %c0_i32 = arith.constant 0 : i32
    %c0_i32_0 = arith.constant 0 : i32
    %c0_i32_1 = arith.constant 0 : i32
    return %c0_i32, %c0_i32_0 : i32, i32
  }
  func.func @transform_2(%arg0: i32) -> (i32, i32) {
    %c0_i32 = arith.constant 0 : i32
    %c0_i32_0 = arith.constant 0 : i32
    %c0_i32_1 = arith.constant 0 : i32
    return %c0_i32, %c0_i32_0 : i32, i32
  }
  func.func @transform_3(%arg0: i32) -> (i32, i32) {
    %c0_i32 = arith.constant 0 : i32
    %c0_i32_0 = arith.constant 0 : i32
    %c0_i32_1 = arith.constant 0 : i32
    return %c0_i32, %c0_i32_0 : i32, i32
  }
  func.func @transform_4(%arg0: i32) -> (i32, i32) {
    %c0_i32 = arith.constant 0 : i32
    %c0_i32_0 = arith.constant 0 : i32
    %c0_i32_1 = arith.constant 0 : i32
    return %c0_i32, %c0_i32_0 : i32, i32
  }
  func.func @transform_5(%arg0: i32) -> (i32, i32) {
    %c0_i32 = arith.constant 0 : i32
    %c0_i32_0 = arith.constant 0 : i32
    return %arg0, %c0_i32 : i32, i32
  }
}

</mosaic_0001>

<bundles_post_ra>
// kernel: tpu_custom_call.1
= control target key start
LH: loop header
LB: loop body
LE: loop exit
PB: predicated region body
PF: predicated region fallthrough
CT: control target
= control target key end

     0   :  { %10 = vsyncpa [#allocation3], 0  ;;  %s1389_s0 = inlined_call_operand.hbm [shape: bf16[256,128], index: 0, kind: input, shape index: {}]   ;;  %s1390_s1 = inlined_call_operand.hbm [shape: bf16[128,128], index: 1, kind: input, shape index: {}]   ;;  %s1391_s2 = inlined_call_operand.vmem [shape: f32[1,128], index: 2, kind: input, shape index: {}]   ;;  %s1392_s3 = inlined_call_operand.hbm [shape: bf16[128,128], index: 3, kind: input, shape index: {}]   ;;  %s1393_s4 = inlined_call_operand.vmem [shape: f32[1,128], index: 4, kind: input, shape index: {}]   ;;  %s1394_s5 = inlined_call_operand.hbm [shape: f32[256,128], index: 5, kind: output, shape index: {}]  }
   0x1   :  { %12 = vsyncpa [#allocation3 + $0x1], 0 }
   0x2   :  { %13 = vsyncpa [#allocation6], 0 }
   0x3   :  { %14 = vsyncpa [#allocation4], 0 }
   0x4   :  { %16 = vsyncpa [#allocation4 + $0x1], 0  ;;  %s1185_s18 = smov 0   ;;  %s1187_s19 = smov 0  }
   0x5   :  { %s1189_s20 = smov 0   ;;  %s1191_s21 = smov 0  }
   0x6 LB: > { %s1206_s22 = sadd.s32 4294967295, %s1147_s21   ;;  %s758_s23 = sadd.s32 4294967294, %s1147_s21   ;;  %s1147_s21 = sphi %s1191_s21, %s1406_s21   ;;  %s1143_s20 = sphi %s1189_s20, %s1405_s20   ;;  %s1139_s19 = sphi %s1187_s19, %s1404_s19   ;;  %s1135_s18 = sphi %s1185_s18, %s1403_s18  }
   0x7   : > { %p42_p0 = scmp.ne.s32.totalorder %s1139_s19, %s1135_s18  ;;  %p43_p1 = scmp.eq.s32.totalorder %s1206_s22, 0 }
   0x8   : > { %p150_p2 = scmp.eq.s32.totalorder %s1206_s22, 1  ;;  %p156_p3 = scmp.eq.s32.totalorder %s758_s23, 1 }
   0x9   : > { %p1215_p4 = por %p43_p1, %p42_p0  ;;  %p759_p5 = scmp.ge.s32.totalorder %s1147_s21, 1 }
   0xa   : > { %p1220_p6 = por %p156_p3, %p42_p0  ;;  %p163_p7 = scmp.lt.s32.totalorder %s1147_s21, 3 }
   0xb   : > { %s174_s28 = sshll.u32 %s1390_s1, 4  ;;  %s1149_s30 = smov [#allocation5]   ;;  %s175_s28 = int_to_ptr.hbm [resolvable:$true] %s174_s28 }
   0xc   : > { %p1228_p8 = pnand %p759_p5, %p163_p7  ;;  %s176_s6 = sshll.u32 %s1149_s30, 4  ;;  %s177_s6 = int_to_ptr.vmem [resolvable:$true] %s176_s6 }
   0xd   : > { %s191_s9 = sshll.u32 %s1392_s3, 4  ;;  %s1395_s10 = smov 64   ;;  %s192_s9 = int_to_ptr.hbm [resolvable:$true] %s191_s9 }
   0xe   : > { %p926_p9 = pneg %p1228_p8  ;;  %s1151_s11 = smov 4  }
   0xf   : > { %s1152_s12 = smov [#allocation7]   ;;  %s1247_s14 = sadd.s32 1, %s1147_s21  }
  0x10   : > { %p927_p10 = pnand %p926_p9, %p43_p1  ;;  %s193_s13 = sshll.u32 %s1152_s12, 4  ;;  %s194_s13 = int_to_ptr.vmem [resolvable:$true] %s193_s13 }
  0x11   : > { %s29_s15 = sadd.s32 1, %s1143_s20  ;;  %s26_s16 = ssub.s32 %s1147_s21, %s1247_s14 }
  0x12   : > { %929 = dma.hbm_to_vmem [thread:$0]  (!%p927_p10), %s175_s28, 1024, %s177_s6, [#allocation6], %s1395_s10, %s1395_s10, %s1151_s11  }
  0x13   : > { %932 = dma.hbm_to_vmem [thread:$0]  (!%p927_p10), %s192_s9, 1024, %s194_s13, [#allocation6], %s1395_s10, %s1395_s10, %s1151_s11  }
  0x14   : > { %p36_p12 = scmp.ne.s32.totalorder %s1143_s20, %s1139_s19  ;;  %p27_p13 = scmp.eq.s32.totalorder %s26_s16, 0 }
  0x15   : > { %p37_p0 = scmp.eq.s32.totalorder %s1147_s21, 0  ;;  %p943_p5 = scmp.lt.s32.totalorder %s1147_s21, 2 }
  0x16   : > { %p1257_p3 = por %p150_p2, %p36_p12  ;;  %s210_s26 = sand.u32 1, %s1143_s20  }
  0x17   : > { %s1263_s23 = scalar_select %p27_p13, %s1143_s20, %s29_s15  }
  0x18   : > { %p38_p7 = por %p37_p0, %p36_p12  ;;  %s763_s27 = sshll.u32 %s210_s26, 6 }
  0x19   : > { %s872_s28 = sshll.u32 %s1147_s21, 6  ;;  %s214_s8 = scalar_lea.vmem [#allocation2], %s763_s27 }
  0x1a   : > { %s219_s7 = scalar_lea.hbm %s1389_s0, %s872_s28  ;;  %s222_s9 = sshll.u32 %s214_s8, 4  ;;  %s223_s9 = int_to_ptr.vmem [resolvable:$true] %s222_s9 }
  0x1b   : > { %s220_s12 = sshll.u32 %s219_s7, 4  ;;  %p1270_p2 = pnand %p943_p5, %p38_p7  ;;  %s221_s12 = int_to_ptr.hbm [resolvable:$true] %s220_s12 }
  0x1c   : > { %s211_s15 = scalar_lea.sflag [#allocation3], %s210_s26  ;;  %s1047_s16 = sshra.s32 %s221_s12, 4  ;;  %s1048_s16 = int_to_ptr.hbm [resolvable:$true] %s1047_s16 }
  0x1d   : > { %s1049_s10 = scalar_lea.hbm %s1048_s16, 64  ;;  %p1051_p10 = pneg %p1270_p2 }
  0x1e   : > { %p1050_p9 = scmp.ne.s32.totalorder %s1048_s16, %s1049_s10  ;;  %s1054_s30 = scalar_lea.hbm %s1389_s0, 128 }
  0x1f   : > { %p1055_p0 = scmp.lt.s32.totalorder %s1048_s16, %s1389_s0  ;;  %p1056_p5 = scmp.lt.s32.totalorder %s1054_s30, %s1049_s10 }
  0x20   : > { %p1052_p12 = pnand %p1051_p10, %p1050_p9 }
  0x21   : > { %p1057_p7 = por %p1056_p5, %p1055_p0 }
  0x22   : > { %p1053_p13 = pneg %p1052_p12 }
  0x24   : > { %p1058_p11 = pnand %p1057_p7, %p1053_p13 }
  0x26   : > { %1061 = shalt.err (!%p1058_p11)
}
  0x27   : > { %s1401_s26 = smov 64   ;;  %234 = sbr.rel (%p1228_p8) target bundleno = 420 (0x1a4), region = 40 }
  0x28   : > { %936 = dma.hbm_to_vmem [thread:$0]  (!%p1270_p2), %s221_s12, 1024, %s223_s9, %s211_s15, %s1401_s26, %s1401_s26, %s1151_s11  }
  0x29   : > { %s1290_s8 = sand.u32 (!%p1228_p8), 1, %s1139_s19  }
  0x2a   : > { %s767_s16 = sshll.u32 (!%p1228_p8), %s1290_s8, 6  ;;  %s237_s10 = scalar_lea.sflag (!%p1228_p8), [#allocation3], %s1290_s8 }
  0x2b   : > { %s1294_s28 = scalar_lea.vmem (!%p1228_p8), [#allocation2], %s767_s16 }
  0x2c   : > { %1122 = dma.done.wait (%p1215_p4), %s237_s10, 1024  }
  0x2d   : > { %1124 = vsyncadd (%p1215_p4), %s237_s10, 4294966272 }
  0x2e   : > { %1126 = dma.done.wait (%p43_p1), [#allocation6], 2048  }
  0x2f   : > { %1128 = vsyncadd (%p43_p1), [#allocation6], 4294965248  ;;  %v888_v0 = vld [vmem:[#allocation5 + $0x38] sm:$0xff]  ;;  %v887_v1 = vld [vmem:[#allocation5 + $0x30] sm:$0xff]  ;;  %s770_s11 = sshll.u32 %s1290_s8, 7  ;;  %s897_s15 = sshll.u32 %s1206_s22, 7 }
  0x30   : > { %412 = vmatpush.bf16.msra.mxu0 %v888_v0  ;;  %898 = vmatpush.bf16.msra.mxu2 %v888_v0  ;;  %v886_v2 = vld [vmem:[#allocation5 + $0x28] sm:$0xff]  ;;  %v885_v3 = vld [vmem:[#allocation5 + $0x20] sm:$0xff]  ;;  %v884_v4 = vld [vmem:[#allocation5 + $0x18] sm:$0xff]  ;;  %s1337_s13 = scalar_lea.vmem [#allocation8], %s770_s11  ;;  %s662_s6 = scalar_lea.hbm %s1394_s5, %s897_s15 }
  0x31   : > { %v883_v5 = vld [vmem:[#allocation5 + $0x10] sm:$0xff]  ;;  %v882_v6 = vld [vmem:[#allocation5 + $0x8] sm:$0xff]  ;;  %v881_v7 = vld [vmem:[#allocation5] sm:$0xff]  ;;  %s663_s7 = sshll.u32 %s1337_s13, 4  ;;  %s665_s26 = sshll.u32 %s662_s6, 4  ;;  %s664_s7 = int_to_ptr.vmem [resolvable:$true] %s663_s7  ;;  %s666_s26 = int_to_ptr.hbm [resolvable:$true] %s665_s26 }
  0x32   : > { %v873_v8 = vld [vmem:[%s1294_s28] sm:$0xff]  ;;  %v874_v10 = vld [vmem:[%s1294_s28 + $0x8] sm:$0xff]  ;;  %v896_v12 = vld [vmem:[#allocation7 + $0x38] sm:$0xff]  ;;  %s651_s16 = scalar_lea.sflag [#allocation4], %s1290_s8  ;;  %s1091_s10 = sshra.s32 %s666_s26, 4  ;;  %s1092_s10 = int_to_ptr.hbm [resolvable:$true] %s1091_s10 }
  0x33   : > { %v877_v9 = vld [vmem:[%s1294_s28 + $0x20] sm:$0xff]  ;;  %v878_v11 = vld [vmem:[%s1294_s28 + $0x28] sm:$0xff]  ;;  %585 = vmatpush.bf16.msra.mxu1 %v896_v12  ;;  %v895_v13 = vld [vmem:[#allocation7 + $0x30] sm:$0xff]  ;;  %906 = vmatpush.bf16.msra.mxu3 %v896_v12  ;;  %s1097_s29 = scalar_lea.hbm %s1394_s5, 256  ;;  %p1098_p11 = scmp.lt.s32.totalorder %s1092_s10, %s1394_s5 }
  0x34   : > { %413 = vmatpush.bf16.msra.mxu0 %v887_v1  ;;  %899 = vmatpush.bf16.msra.mxu2 %v887_v1  ;;  %v894_v14 = vld [vmem:[#allocation7 + $0x28] sm:$0xff]  ;;  %v893_v15 = vld [vmem:[#allocation7 + $0x20] sm:$0xff]  ;;  %v875_v16 = vld [vmem:[%s1294_s28 + $0x10] sm:$0xff] }
  0x35   : > { %v879_v17 = vld [vmem:[%s1294_s28 + $0x30] sm:$0xff]  ;;  %v876_v18 = vld [vmem:[%s1294_s28 + $0x18] sm:$0xff]  ;;  %v890_v22 = vld [vmem:[#allocation7 + $0x8] sm:$0xff] }
  0x36   : > { %v880_v19 = vld [vmem:[%s1294_s28 + $0x38] sm:$0xff]  ;;  %v891_v21 = vld [vmem:[#allocation7 + $0x10] sm:$0xff]  ;;  %v889_v23 = vld [vmem:[#allocation7] sm:$0xff]  ;;  %s1093_s28 = scalar_lea.hbm %s1092_s10, 128 }
  0x37   : > { %586 = vmatpush.bf16.msra.mxu1 %v895_v13  ;;  %907 = vmatpush.bf16.msra.mxu3 %v895_v13  ;;  %v892_v20 = vld [vmem:[#allocation7 + $0x18] sm:$0xff]  ;;  %v1315_v25 = vld [vmem:[%s1391_s2] ss:$0 sm:$0xff]  ;;  %p1094_p1 = scmp.ne.s32.totalorder %s1092_s10, %s1093_s28  ;;  %p1099_p2 = scmp.lt.s32.totalorder %s1097_s29, %s1093_s28 }
  0x38   : > { %414 = vmatpush.bf16.msra.mxu0 %v886_v2  ;;  %900 = vmatpush.bf16.msra.mxu2 %v886_v2 }
  0x39   : > { %p1095_p4 = pnand %p1094_p1, %p1257_p3  ;;  %p1100_p9 = por %p1099_p2, %p1098_p11 }
  0x3b   : > { %587 = vmatpush.bf16.msra.mxu1 %v894_v14  ;;  %908 = vmatpush.bf16.msra.mxu3 %v894_v14  ;;  %p1096_p8 = pneg %p1095_p4 }
  0x3c   : > { %415 = vmatpush.bf16.msra.mxu0 %v885_v3  ;;  %901 = vmatpush.bf16.msra.mxu2 %v885_v3 }
  0x3d   : > { %p1101_p10 = pnand %p1100_p9, %p1096_p8 }
  0x3f   : > { %588 = vmatpush.bf16.msra.mxu1 %v893_v15  ;;  %909 = vmatpush.bf16.msra.mxu3 %v893_v15 }
  0x40   : > { %416 = vmatpush.bf16.msra.mxu0 %v884_v4  ;;  %902 = vmatpush.bf16.msra.mxu2 %v884_v4 }
  0x43   : > { %589 = vmatpush.bf16.msra.mxu1 %v892_v20  ;;  %910 = vmatpush.bf16.msra.mxu3 %v892_v20 }
  0x44   : > { %417 = vmatpush.bf16.msra.mxu0 %v883_v5  ;;  %903 = vmatpush.bf16.msra.mxu2 %v883_v5 }
  0x47   : > { %590 = vmatpush.bf16.msra.mxu1 %v891_v21  ;;  %911 = vmatpush.bf16.msra.mxu3 %v891_v21 }
  0x48   : > { %418 = vmatpush.bf16.msra.mxu0 %v882_v6  ;;  %904 = vmatpush.bf16.msra.mxu2 %v882_v6 }
  0x4b   : > { %591 = vmatpush.bf16.msra.mxu1 %v890_v22  ;;  %912 = vmatpush.bf16.msra.mxu3 %v890_v22 }
  0x4c   : > { %419 = vmatpush.bf16.msra.mxu0 %v881_v7  ;;  %905 = vmatpush.bf16.msra.mxu2 %v881_v7 }
  0x4f   : > { %420 = vmatmul.bf16.vlgmr.msra.gmra.mxu0 %v873_v8  ;;  %440 = vmatmul.bf16.vlgmr.msra.gmra.mxu2 %v877_v9 }
  0x50   : > { %592 = vmatpush.bf16.msra.mxu1 %v889_v23  ;;  %913 = vmatpush.bf16.msra.mxu3 %v889_v23 }
  0x5f   : > { %425 = vmatmul.bf16.gmra.mxu0 %v874_v10  ;;  %445 = vmatmul.bf16.gmra.mxu2 %v878_v11 }
  0x6f   : > { %430 = vmatmul.bf16.gmra.mxu0 %v875_v16  ;;  %450 = vmatmul.bf16.gmra.mxu2 %v879_v17 }
  0x7f   : > { %435 = vmatmul.bf16.gmra.mxu0 %v876_v18  ;;  %455 = vmatmul.bf16.gmra.mxu2 %v880_v19 }
  0xcc   : > { %v421_v24 = vpop.f32.mrf.mxu0 }
  0xcd   : > { %v422_v26 = vadd.f32 %v1315_v25, %v421_v24 }
  0xcf   : > { %v477_v28 = vmul.f32 0.01, %v422_v26  ;;  %vm461_vm0 = vcmp.gt.f32.partialorder %v422_v26, 0.0 }
  0xd1   : > { %v493_v33 = vsel %vm461_vm0, %v422_v26, %v477_v28 }
  0xd2   : > { %v441_v27 = vpop.f32.mrf.mxu2 }
  0xd3   : > { %v442_v31 = vadd.f32 %v1315_v25, %v441_v27 }
  0xd4   : > { %v423_v29 = vpop.f32.mrf.mxu0 }
  0xd5   : > { %v424_v30 = vadd.f32 %v1315_v25, %v423_v29  ;;  %v485_v37 = vmul.f32 0.01, %v442_v31  ;;  %vm469_vm2 = vcmp.gt.f32.partialorder %v442_v31, 0.0 }
  0xd7   : > { %v478_v32 = vmul.f32 0.01, %v424_v30  ;;  %vm462_vm1 = vcmp.gt.f32.partialorder %v424_v30, 0.0  ;;  %v501_v42 = vsel %vm469_vm2, %v442_v31, %v485_v37 }
  0xd9   : > { %v494_v34 = vsel %vm462_vm1, %v424_v30, %v478_v32 }
  0xda   : > { %v443_v35 = vpop.f32.mrf.mxu2  ;;  %v509_v36 = vpack.c.bf16 %v494_v34, %v493_v33  ;;  %v986_v34 = vld [vmem:[%s1393_s4] ss:$0 sm:$0xff] }
  0xdb   : > { %v444_v38 = vadd.f32 %v1315_v25, %v443_v35 }
  0xdc   : > { %v426_v39 = vpop.f32.mrf.mxu0  ;;  %593 = vmatmul.bf16.vlgmr.msra.gmra.mxu1 %v509_v36 }
  0xdd   : > { %v486_v40 = vmul.f32 0.01, %v444_v38  ;;  %vm470_vm3 = vcmp.gt.f32.partialorder %v444_v38, 0.0  ;;  %v427_v41 = vadd.f32 %v1315_v25, %v426_v39 }
  0xdf   : > { %v502_v43 = vsel %vm470_vm3, %v444_v38, %v486_v40  ;;  %v479_v46 = vmul.f32 0.01, %v427_v41  ;;  %vm463_vm4 = vcmp.gt.f32.partialorder %v427_v41, 0.0 }
  0xe0   : > { %v513_v44 = vpack.c.bf16 %v502_v43, %v501_v42 }
  0xe1   : > { %v495_v51 = vsel %vm463_vm4, %v427_v41, %v479_v46 }
  0xe2   : > { %v446_v45 = vpop.f32.mrf.mxu2  ;;  %613 = vmatmul.bf16.vlgmr.msra.gmra.mxu3 %v513_v44 }
  0xe3   : > { %v447_v49 = vadd.f32 %v1315_v25, %v446_v45 }
  0xe4   : > { %v428_v47 = vpop.f32.mrf.mxu0 }
  0xe5   : > { %v429_v48 = vadd.f32 %v1315_v25, %v428_v47  ;;  %v487_v55 = vmul.f32 0.01, %v447_v49  ;;  %vm471_vm6 = vcmp.gt.f32.partialorder %v447_v49, 0.0 }
  0xe7   : > { %v480_v50 = vmul.f32 0.01, %v429_v48  ;;  %vm464_vm5 = vcmp.gt.f32.partialorder %v429_v48, 0.0  ;;  %v503_v60 = vsel %vm471_vm6, %v447_v49, %v487_v55 }
  0xe9   : > { %v496_v52 = vsel %vm464_vm5, %v429_v48, %v480_v50 }
  0xea   : > { %v448_v53 = vpop.f32.mrf.mxu2  ;;  %v510_v54 = vpack.c.bf16 %v496_v52, %v495_v51 }
  0xeb   : > { %v449_v56 = vadd.f32 %v1315_v25, %v448_v53 }
  0xec   : > { %v431_v57 = vpop.f32.mrf.mxu0  ;;  %598 = vmatmul.bf16.gmra.mxu1 %v510_v54 }
  0xed   : > { %v488_v58 = vmul.f32 0.01, %v449_v56  ;;  %vm472_vm7 = vcmp.gt.f32.partialorder %v449_v56, 0.0  ;;  %v432_v59 = vadd.f32 %v1315_v25, %v431_v57 }
  0xef   : > { %v504_v61 = vsel %vm472_vm7, %v449_v56, %v488_v58  ;;  %v481_v0 = vmul.f32 0.01, %v432_v59  ;;  %vm465_vm8 = vcmp.gt.f32.partialorder %v432_v59, 0.0 }
  0xf0   : > { %v514_v62 = vpack.c.bf16 %v504_v61, %v503_v60 }
  0xf1   : > { %v497_v5 = vsel %vm465_vm8, %v432_v59, %v481_v0 }
  0xf2   : > { %v451_v63 = vpop.f32.mrf.mxu2  ;;  %618 = vmatmul.bf16.gmra.mxu3 %v514_v62 }
  0xf3   : > { %v452_v3 = vadd.f32 %v1315_v25, %v451_v63 }
  0xf4   : > { %v433_v1 = vpop.f32.mrf.mxu0 }
  0xf5   : > { %v434_v2 = vadd.f32 %v1315_v25, %v433_v1  ;;  %v489_v9 = vmul.f32 0.01, %v452_v3  ;;  %vm473_vm10 = vcmp.gt.f32.partialorder %v452_v3, 0.0 }
  0xf7   : > { %v482_v4 = vmul.f32 0.01, %v434_v2  ;;  %vm466_vm9 = vcmp.gt.f32.partialorder %v434_v2, 0.0  ;;  %v505_v14 = vsel %vm473_vm10, %v452_v3, %v489_v9 }
  0xf9   : > { %v498_v6 = vsel %vm466_vm9, %v434_v2, %v482_v4 }
  0xfa   : > { %v453_v7 = vpop.f32.mrf.mxu2  ;;  %v511_v8 = vpack.c.bf16 %v498_v6, %v497_v5 }
  0xfb   : > { %v454_v10 = vadd.f32 %v1315_v25, %v453_v7 }
  0xfc   : > { %v436_v11 = vpop.f32.mrf.mxu0  ;;  %603 = vmatmul.bf16.gmra.mxu1 %v511_v8 }
  0xfd   : > { %v490_v12 = vmul.f32 0.01, %v454_v10  ;;  %vm474_vm11 = vcmp.gt.f32.partialorder %v454_v10, 0.0  ;;  %v437_v13 = vadd.f32 %v1315_v25, %v436_v11 }
  0xff   : > { %v506_v15 = vsel %vm474_vm11, %v454_v10, %v490_v12  ;;  %v483_v18 = vmul.f32 0.01, %v437_v13  ;;  %vm467_vm12 = vcmp.gt.f32.partialorder %v437_v13, 0.0 }
 0x100   : > { %v515_v16 = vpack.c.bf16 %v506_v15, %v505_v14 }
 0x101   : > { %v499_v23 = vsel %vm467_vm12, %v437_v13, %v483_v18 }
 0x102   : > { %v456_v17 = vpop.f32.mrf.mxu2  ;;  %623 = vmatmul.bf16.gmra.mxu3 %v515_v16 }
 0x103   : > { %v457_v21 = vadd.f32 %v1315_v25, %v456_v17 }
 0x104   : > { %v438_v19 = vpop.f32.mrf.mxu0 }
 0x105   : > { %v439_v20 = vadd.f32 %v1315_v25, %v438_v19  ;;  %v491_v28 = vmul.f32 0.01, %v457_v21  ;;  %vm475_vm14 = vcmp.gt.f32.partialorder %v457_v21, 0.0 }
 0x107   : > { %v484_v22 = vmul.f32 0.01, %v439_v20  ;;  %vm468_vm13 = vcmp.gt.f32.partialorder %v439_v20, 0.0  ;;  %v507_v31 = vsel %vm475_vm14, %v457_v21, %v491_v28 }
 0x109   : > { %v500_v24 = vsel %vm468_vm13, %v439_v20, %v484_v22 }
 0x10a   : > { %v458_v26 = vpop.f32.mrf.mxu2  ;;  %v512_v27 = vpack.c.bf16 %v500_v24, %v499_v23 }
 0x10b   : > { %v459_v29 = vadd.f32 %v1315_v25, %v458_v26 }
 0x10c   : > { %608 = vmatmul.bf16.gmra.mxu1 %v512_v27 }
 0x10d   : > { %v492_v30 = vmul.f32 0.01, %v459_v29  ;;  %vm476_vm15 = vcmp.gt.f32.partialorder %v459_v29, 0.0 }
 0x10f   : > { %v508_v32 = vsel %vm476_vm15, %v459_v29, %v492_v30 }
 0x110   : > { %v516_v33 = vpack.c.bf16 %v508_v32, %v507_v31 }
 0x112   : > { %628 = vmatmul.bf16.gmra.mxu3 %v516_v33 }
 0x159   : > { %v594_v35 = vpop.f32.mrf.mxu1 }
 0x15a   : > { %v595_v36 = vadd.f32 %v986_v34, %v594_v35 }
 0x15c   : > { %634 = vst [vmem:[%s1337_s13] sm:$0xff] %v595_v36 }
 0x161   : > { %v596_v25 = vpop.f32.mrf.mxu1 }
 0x162   : > { %v597_v37 = vadd.f32 %v986_v34, %v596_v25 }
 0x164   : > { %635 = vst [vmem:[%s1337_s13 + $0x8] sm:$0xff] %v597_v37 }
 0x165   : > { %v614_v38 = vpop.f32.mrf.mxu3 }
 0x166   : > { %v615_v39 = vadd.f32 %v986_v34, %v614_v38 }
 0x168   : > { %642 = vst [vmem:[%s1337_s13 + $0x40] sm:$0xff] %v615_v39 }
 0x169   : > { %v599_v40 = vpop.f32.mrf.mxu1 }
 0x16a   : > { %v600_v41 = vadd.f32 %v986_v34, %v599_v40 }
 0x16c   : > { %636 = vst [vmem:[%s1337_s13 + $0x10] sm:$0xff] %v600_v41 }
 0x16d   : > { %v616_v42 = vpop.f32.mrf.mxu3 }
 0x16e   : > { %v617_v43 = vadd.f32 %v986_v34, %v616_v42 }
 0x170   : > { %643 = vst [vmem:[%s1337_s13 + $0x48] sm:$0xff] %v617_v43 }
 0x171   : > { %v601_v44 = vpop.f32.mrf.mxu1 }
 0x172   : > { %v602_v45 = vadd.f32 %v986_v34, %v601_v44 }
 0x174   : > { %637 = vst [vmem:[%s1337_s13 + $0x18] sm:$0xff] %v602_v45 }
 0x175   : > { %v619_v46 = vpop.f32.mrf.mxu3 }
 0x176   : > { %v620_v47 = vadd.f32 %v986_v34, %v619_v46 }
 0x178   : > { %644 = vst [vmem:[%s1337_s13 + $0x50] sm:$0xff] %v620_v47 }
 0x179   : > { %v604_v48 = vpop.f32.mrf.mxu1 }
 0x17a   : > { %v605_v49 = vadd.f32 %v986_v34, %v604_v48 }
 0x17c   : > { %638 = vst [vmem:[%s1337_s13 + $0x20] sm:$0xff] %v605_v49 }
 0x17d   : > { %v621_v50 = vpop.f32.mrf.mxu3 }
 0x17e   : > { %v622_v51 = vadd.f32 %v986_v34, %v621_v50 }
 0x180   : > { %645 = vst [vmem:[%s1337_s13 + $0x58] sm:$0xff] %v622_v51 }
 0x181   : > { %v606_v52 = vpop.f32.mrf.mxu1 }
 0x182   : > { %v607_v53 = vadd.f32 %v986_v34, %v606_v52 }
 0x184   : > { %639 = vst [vmem:[%s1337_s13 + $0x28] sm:$0xff] %v607_v53 }
 0x185   : > { %v624_v54 = vpop.f32.mrf.mxu3 }
 0x186   : > { %v625_v55 = vadd.f32 %v986_v34, %v624_v54 }
 0x188   : > { %646 = vst [vmem:[%s1337_s13 + $0x60] sm:$0xff] %v625_v55 }
 0x189   : > { %v609_v56 = vpop.f32.mrf.mxu1 }
 0x18a   : > { %v610_v57 = vadd.f32 %v986_v34, %v609_v56 }
 0x18c   : > { %640 = vst [vmem:[%s1337_s13 + $0x30] sm:$0xff] %v610_v57 }
 0x18d   : > { %v626_v58 = vpop.f32.mrf.mxu3 }
 0x18e   : > { %v627_v59 = vadd.f32 %v986_v34, %v626_v58 }
 0x190   : > { %647 = vst [vmem:[%s1337_s13 + $0x68] sm:$0xff] %v627_v59 }
 0x191   : > { %v611_v60 = vpop.f32.mrf.mxu1 }
 0x192   : > { %v612_v61 = vadd.f32 %v986_v34, %v611_v60 }
 0x194   : > { %641 = vst [vmem:[%s1337_s13 + $0x38] sm:$0xff] %v612_v61 }
 0x195   : > { %v629_v62 = vpop.f32.mrf.mxu3 }
 0x196   : > { %v630_v63 = vadd.f32 %v986_v34, %v629_v62 }
 0x198   : > { %648 = vst [vmem:[%s1337_s13 + $0x70] sm:$0xff] %v630_v63 }
 0x19d   : > { %v631_v0 = vpop.f32.mrf.mxu3 }
 0x19e   : > { %v632_v1 = vadd.f32 %v986_v34, %v631_v0 }
 0x1a0   : > { %649 = vst [vmem:[%s1337_s13 + $0x78] sm:$0xff] %v632_v1 }
 0x1a1   : > { %1104 = shalt.err (!%p1101_p10)
}
 0x1a2   : > { %s1153_s8 = smov 128   ;;  %s1154_s12 = smov 8  }
 0x1a3   : > { %924 = dma.vmem_to_hbm [thread:$0]  (%p1257_p3), %s664_s7, 2048, %s666_s26, %s651_s16, %s1153_s8, %s1153_s8, %s1154_s12  }
 0x1a4 PF: > { %s680_s13 = sand.u32 1, %s1135_s18   ;;  %p1402_p12 = scmp.ge.s32.totalorder %s1147_s21, 2 }
 0x1a5   : > { %s681_s15 = scalar_lea.sflag [#allocation4], %s680_s13 }
 0x1a6   : > { %p938_p13 = pnand %p1402_p12, %p1220_p6 }
 0x1a8   : > { %p939_p0 = pneg %p938_p13 }
 0x1aa   : > { %1130 = dma.done.wait (%p939_p0), %s681_s15, 2048  }
 0x1ab   : > { %1132 = vsyncadd (%p939_p0), %s681_s15, 4294965248  ;;  %p19_p5 = scmp.ge.s32.totalorder %s1247_s14, 4   ;;  %s1403_s18 = smov %s1139_s19 }
 0x1ac   : > { %s1404_s19 = smov %s1143_s20  ;;  %s1405_s20 = smov %s1263_s23 }
 0x1ad   : > { %s1406_s21 = smov %s1247_s14  ;;  %21 = sbr.rel (!%p19_p5) target bundleno = 6 (0x6), region = 93 }
 0x1b2   :  { %687 = vsyncpa [#allocation3], 1 }
 0x1b3   :  { %689 = vsyncpa [#allocation3 + $0x1], 1 }
 0x1b4   :  { %690 = vsyncpa [#allocation6], 1 }
 0x1b5   :  { %691 = vsyncpa [#allocation4], 1 }
 0x1b6   :  { %693 = vsyncpa [#allocation4 + $0x1], 1 }

</bundles_post_ra>
